<compile_context>
chip_gen: v5e
topology: v5e:2x2
jax: 0.10.0
libtpu: 0.0.40
codegen_flags: <defaults>
</compile_context>

<pallas_src>
import functools

import jax
import jax.numpy as jnp
from jax import lax
from jax.experimental import pallas as pl
from jax.experimental.pallas import tpu as pltpu

ALPHA = 1.0
GAMMA = 2
LANES = 128
SUBLANES = 8
CHUNK_ROWS = 64        # in-kernel chunk: 64 x 128 f32 = 8 vregs per temporary
MAX_TILE_ROWS = 4096   # 4096 x 128 x 4 B = 2 MiB per input block


def _cdiv(a, b):
    return -(-a // b)


def _round_up(v, m):
    return _cdiv(v, m) * m


def _chunk_partial(x_ref, t_ref, row_start, *, chunk_rows, gamma, valid_n,
                   tile_base):
    """Focal loss on a (chunk_rows, LANES) slice, tree-reduced to (8, LANES)."""
    x = x_ref[pl.ds(row_start, chunk_rows), :].astype(jnp.float32)
    t = t_ref[pl.ds(row_start, chunk_rows), :].astype(jnp.float32)

    # One shared EUP exp feeds both the stable BCE term and the sigmoid.
    e = jnp.exp(-jnp.abs(x))                      # exp(-|x|) in (0, 1]
    # Numerically stable BCE with logits (== F.binary_cross_entropy_with_logits,
    # reduction='none', pos_weight=None): max(x, 0) - x*t + log1p(exp(-|x|)).
    bce = jnp.maximum(x, 0.0) - x * t + jnp.log1p(e)

    # sigmoid(x) from the shared e: 1/(1+e) if x >= 0 else e/(1+e).
    d = 1.0 + e
    inv = pl.reciprocal(d, approx=True)           # EUP vrcp
    inv = inv * (2.0 - d * inv)                   # one Newton step -> ~f32 accuracy
    probs = jnp.where(x >= 0.0, inv, e * inv)

    # Matches torch.where(targets == 1, probs, 1 - probs) (exact float compare).
    pt = jnp.where(t == 1.0, probs, 1.0 - probs)
    w = 1.0 - pt

    # Focal weight: integer gamma -> repeated VPU multiplies starting at w
    # (no ones_like broadcast); fractional gamma pays for a pow on the EUP.
    if float(gamma) == int(gamma) and int(gamma) >= 0:
        g = int(gamma)
        if g == 0:
            loss = bce
        else:
            fw = w
            for _ in range(g - 1):
                fw = fw * w
            loss = fw * bce
    else:
        loss = (w ** jnp.float32(gamma)) * bce

    if valid_n is not None:
        # Zero out wrapper padding (this branch only exists when padding does).
        row_g = tile_base + row_start + lax.broadcasted_iota(
            jnp.int32, (chunk_rows, LANES), 0)
        lane = lax.broadcasted_iota(jnp.int32, (chunk_rows, LANES), 1)
        loss = jnp.where(row_g * LANES + lane < valid_n, loss, 0.0)

    # Tree-reduce (chunk_rows, LANES) -> (8, LANES): log-depth VPU adds,
    # no XLU cross-lane reduce, no long serial dependency chain.
    parts = [loss[g * SUBLANES:(g + 1) * SUBLANES, :]
             for g in range(chunk_rows // SUBLANES)]
    while len(parts) > 1:
        nxt = [a + b for a, b in zip(parts[0::2], parts[1::2])]
        if len(parts) % 2:
            nxt.append(parts[-1])
        parts = nxt
    return parts[0]


def _focal_loss_partial_kernel(x_ref, t_ref, partial_ref, *, gamma, chunk_rows,
                               valid_n):
    tile_rows = x_ref.shape[0]
    num_chunks = tile_rows // chunk_rows
    tile_base = pl.program_id(0) * tile_rows if valid_n is not None else 0

    chunk = functools.partial(_chunk_partial, x_ref, t_ref,
                              chunk_rows=chunk_rows, gamma=gamma,
                              valid_n=valid_n, tile_base=tile_base)

    if num_chunks == 1:
        partial_ref[...] = chunk(0)
        return

    zero = jnp.zeros((SUBLANES, LANES), jnp.float32)
    n_pairs = num_chunks // 2

    def body(i, carry):
        # Two chunks per iteration into two independent accumulators so the
        # adds are not one serial chain.
        a0, a1 = carry
        r = pl.multiple_of(i * (2 * chunk_rows), chunk_rows)
        a0 = a0 + chunk(r)
        a1 = a1 + chunk(r + chunk_rows)
        return (a0, a1)

    a0, a1 = lax.fori_loop(0, n_pairs, body, (zero, zero), unroll=2)
    if num_chunks % 2:
        a0 = a0 + chunk((num_chunks - 1) * chunk_rows)
    partial_ref[...] = a0 + a1


def focal_loss_mean(inputs, targets, alpha=ALPHA, gamma=GAMMA):
    """Mean-reduced binary focal loss over logits `inputs` and {0,1} `targets`."""
    assert inputs.shape == targets.shape
    total_n = int(inputs.size)
    assert total_n > 0

    rows = _cdiv(total_n, LANES)

    # Tile selection: largest lane-dense row tile (<= MAX_TILE_ROWS), rounded
    # to the chunk granularity; prefer an even tile count (> 1) so both v7x
    # TensorCores get balanced work on the "parallel" grid axis.
    if rows <= CHUNK_ROWS:
        tile_rows = _round_up(rows, SUBLANES)
        chunk_rows = tile_rows
        num_tiles = 1
    else:
        chunk_rows = CHUNK_ROWS
        tile_rows = min(MAX_TILE_ROWS, _round_up(rows, chunk_rows))
        num_tiles = _cdiv(rows, tile_rows)
        if num_tiles > 1 and num_tiles % 2:
            num_tiles += 1
            tile_rows = min(MAX_TILE_ROWS,
                            _round_up(_cdiv(rows, num_tiles), chunk_rows))
            num_tiles = _cdiv(rows, tile_rows)

    padded_rows = num_tiles * tile_rows
    padded_n = padded_rows * LANES

    x_flat = inputs.reshape(-1)
    t_flat = targets.reshape(-1)
    if padded_n != total_n:
        pad = padded_n - total_n
        x_flat = jnp.pad(x_flat, (0, pad))
        t_flat = jnp.pad(t_flat, (0, pad))
        valid_n = total_n          # enables in-kernel masking of the padding
    else:
        valid_n = None             # masking compiled out entirely

    x2 = x_flat.reshape(padded_rows, LANES)
    t2 = t_flat.reshape(padded_rows, LANES)

    kernel = functools.partial(_focal_loss_partial_kernel, gamma=gamma,
                               chunk_rows=chunk_rows, valid_n=valid_n)

    # 2 inputs x 2 pipeline buffers x f32 block, plus headroom; at least the
    # v5e default scoped limit so the request is safe on every generation.
    vmem_bytes = max(int(4 * tile_rows * LANES * 4 * 1.5) + (1 << 20),
                     16 * 1024 * 1024)

    in_bytes = (x2.size * x2.dtype.itemsize + t2.size * t2.dtype.itemsize)
    out_bytes = num_tiles * SUBLANES * LANES * 4
    cost = pl.CostEstimate(flops=22 * padded_n,
                           transcendentals=3 * padded_n,
                           bytes_accessed=in_bytes + out_bytes)

    partials = pl.pallas_call(
        kernel,
        out_shape=jax.ShapeDtypeStruct((num_tiles, SUBLANES, LANES),
                                       jnp.float32),
        grid_spec=pltpu.PrefetchScalarGridSpec(
            num_scalar_prefetch=0,
            grid=(num_tiles,),
            in_specs=[
                pl.BlockSpec((tile_rows, LANES), lambda i: (i, 0)),
                pl.BlockSpec((tile_rows, LANES), lambda i: (i, 0)),
            ],
            # Leading tile index is squeezed; the kernel writes a lane-dense
            # (8, 128) block -> unmasked vst.
            out_specs=pl.BlockSpec((None, SUBLANES, LANES),
                                   lambda i: (i, 0, 0)),
        ),
        compiler_params=pltpu.CompilerParams(
            dimension_semantics=("parallel",),
            vmem_limit_bytes=vmem_bytes,
        ),
        cost_estimate=cost,
    )(x2, t2)

    # alpha and 1/N folded into one trace-time scale; the cross-tile reduction
    # is a tiny XLA op on (num_tiles, 8, 128).
    return jnp.sum(partials) * jnp.float32(alpha / total_n)


def _reference_focal_loss(inputs, targets, alpha=ALPHA, gamma=GAMMA):
    x = inputs.astype(jnp.float32)
    t = targets.astype(jnp.float32)
    bce = jnp.maximum(x, 0.0) - x * t + jnp.log1p(jnp.exp(-jnp.abs(x)))
    probs = jax.nn.sigmoid(x)
    pt = jnp.where(t == 1.0, probs, 1.0 - probs)
    loss = alpha * (1.0 - pt) ** gamma * bce
    return jnp.mean(loss)


if __name__ == "__main__":
    key = jax.random.PRNGKey(0)

    def _check(shape, k):
        k1, k2 = jax.random.split(k)
        x = jax.random.normal(k1, shape, dtype=jnp.float32) * 2.0
        t = jax.random.bernoulli(k2, p=0.3, shape=shape).astype(jnp.float32)
        out = jax.block_until_ready(focal_loss_mean(x, t))
        ref = _reference_focal_loss(x, t)
        assert jnp.allclose(out, ref, rtol=1e-5, atol=1e-6), (shape, out, ref)

    k0, k1, k2 = jax.random.split(key, 3)
    # Main demo: NCHW logits / binary targets (single tile, no padding).
    _check((2, 4, 16, 16), k0)
    # Non-divisible element count -> exercises pad-to-tile + in-kernel mask.
    _check((3, 5, 7, 11), k1)
    # Larger case -> exercises the chunked fori_loop / dual-accumulator path.
    _check((4, 4, 32, 32), k2)

    print("KERNEL_OK")
</pallas_src>

<mosaic_0001>
module attributes {stable_mosaic.version = 11 : i64} {
  func.func @_focal_loss_partial_kernel(%arg0: i32, %arg1: memref<16x128xf32, #tpu.memory_space<vmem>>, %arg2: memref<16x128xf32, #tpu.memory_space<vmem>>, %arg3: memref<1x8x128xf32, #tpu.memory_space<vmem>>) attributes {dimension_semantics = [#tpu.dimension_semantics<parallel>], iteration_bounds = array<i64: 1>, scalar_prefetch = 0 : i64, scratch_operands = 0 : i64, tpu.core_type = #tpu.core_type<tc>, window_params = [{transform_indices = @transform_0, window_bounds = array<i64: 16, 128>}, {transform_indices = @transform_1, window_bounds = array<i64: 16, 128>}, {transform_indices = @transform_2, window_bounds = array<i64: 1, 8, 128>}]} {
    %c0 = arith.constant 0 : index
    %c0_0 = arith.constant 0 : index
    %0 = vector.load %arg1[%c0, %c0_0] : memref<16x128xf32, #tpu.memory_space<vmem>>, vector<16x128xf32>
    %c0_1 = arith.constant 0 : index
    %c0_2 = arith.constant 0 : index
    %1 = vector.load %arg2[%c0_1, %c0_2] : memref<16x128xf32, #tpu.memory_space<vmem>>, vector<16x128xf32>
    %2 = math.absf %0 : vector<16x128xf32>
    %cst = arith.constant 0.000000e+00 : f32
    %3 = vector.broadcast %cst : f32 to vector<16x128xf32>
    %4 = arith.subf %3, %2 : vector<16x128xf32>
    %5 = math.exp %4 : vector<16x128xf32>
    %cst_3 = arith.constant 0.000000e+00 : f32
    %6 = vector.broadcast %cst_3 : f32 to vector<16x128xf32>
    %7 = arith.maximumf %0, %6 : vector<16x128xf32>
    %8 = arith.mulf %0, %1 : vector<16x128xf32>
    %9 = arith.subf %7, %8 : vector<16x128xf32>
    %10 = math.log1p %5 : vector<16x128xf32>
    %11 = arith.addf %9, %10 : vector<16x128xf32>
    %cst_4 = arith.constant 1.000000e+00 : f32
    %12 = vector.broadcast %cst_4 : f32 to vector<16x128xf32>
    %13 = arith.addf %12, %5 : vector<16x128xf32>
    %14 = tpu.reciprocal %13 {approx = true} : vector<16x128xf32> -> vector<16x128xf32>
    %15 = arith.mulf %13, %14 : vector<16x128xf32>
    %cst_5 = arith.constant 2.000000e+00 : f32
    %16 = vector.broadcast %cst_5 : f32 to vector<16x128xf32>
    %17 = arith.subf %16, %15 : vector<16x128xf32>
    %18 = arith.mulf %14, %17 : vector<16x128xf32>
    %cst_6 = arith.constant 0.000000e+00 : f32
    %19 = vector.broadcast %cst_6 : f32 to vector<16x128xf32>
    %20 = arith.cmpf oge, %0, %19 : vector<16x128xf32>
    %21 = arith.mulf %5, %18 : vector<16x128xf32>
    %22 = arith.select %20, %18, %21 : vector<16x128xi1>, vector<16x128xf32>
    %cst_7 = arith.constant 1.000000e+00 : f32
    %23 = vector.broadcast %cst_7 : f32 to vector<16x128xf32>
    %24 = arith.cmpf oeq, %1, %23 : vector<16x128xf32>
    %cst_8 = arith.constant 1.000000e+00 : f32
    %25 = vector.broadcast %cst_8 : f32 to vector<16x128xf32>
    %26 = arith.subf %25, %22 : vector<16x128xf32>
    %27 = arith.select %24, %22, %26 : vector<16x128xi1>, vector<16x128xf32>
    %cst_9 = arith.constant 1.000000e+00 : f32
    %28 = vector.broadcast %cst_9 : f32 to vector<16x128xf32>
    %29 = arith.subf %28, %27 : vector<16x128xf32>
    %30 = arith.mulf %29, %29 : vector<16x128xf32>
    %31 = arith.mulf %30, %11 : vector<16x128xf32>
    %32 = vector.extract_strided_slice %31 {offsets = [0, 0], sizes = [8, 128], strides = [1, 1]} : vector<16x128xf32> to vector<8x128xf32>
    %33 = vector.extract_strided_slice %31 {offsets = [8, 0], sizes = [8, 128], strides = [1, 1]} : vector<16x128xf32> to vector<8x128xf32>
    %34 = arith.addf %32, %33 : vector<8x128xf32>
    %c0_10 = arith.constant 0 : index
    %c0_11 = arith.constant 0 : index
    %c0_12 = arith.constant 0 : index
    %35 = vector.load %arg3[%c0_10, %c0_11, %c0_12] : memref<1x8x128xf32, #tpu.memory_space<vmem>>, vector<1x8x128xf32>
    %36 = vector.shape_cast %35 : vector<1x8x128xf32> to vector<8x128xf32>
    %37 = vector.shape_cast %34 : vector<8x128xf32> to vector<1x8x128xf32>
    tpu.vector_store %arg3[%c0_10, %c0_11, %c0_12], %37 {strides = array<i32>} : memref<1x8x128xf32, #tpu.memory_space<vmem>>, vector<1x8x128xf32>,
    return
  }
  func.func @transform_0(%arg0: i32) -> (i32, i32) {
    %c0_i32 = arith.constant 0 : i32
    %c0_i32_0 = arith.constant 0 : i32
    return %arg0, %c0_i32 : i32, i32
  }
  func.func @transform_1(%arg0: i32) -> (i32, i32) {
    %c0_i32 = arith.constant 0 : i32
    %c0_i32_0 = arith.constant 0 : i32
    return %arg0, %c0_i32 : i32, i32
  }
  func.func @transform_2(%arg0: i32) -> (i32, i32, i32) {
    %c0_i32 = arith.constant 0 : i32
    %c0_i32_0 = arith.constant 0 : i32
    %c0_i32_1 = arith.constant 0 : i32
    return %arg0, %c0_i32, %c0_i32_0 : i32, i32, i32
  }
}

</mosaic_0001>

<bundles_post_ra>
// kernel: tpu_custom_call.1
= control target key start
LH: loop header
LB: loop body
LE: loop exit
PB: predicated region body
PF: predicated region fallthrough
CT: control target
= control target key end

     0   :  { %7 = vsyncpa [#allocation3], 0  ;;  %s266_s0 = inlined_call_operand.hbm [shape: f32[16,128], index: 0, kind: input, shape index: {}]   ;;  %s267_s1 = inlined_call_operand.hbm [shape: f32[16,128], index: 1, kind: input, shape index: {}]   ;;  %s268_s2 = inlined_call_operand.hbm [shape: f32[1,8,128], index: 2, kind: output, shape index: {}]  }
   0x1   :  { %8 = vsyncpa [#allocation6], 0 }
   0x2   :  { %9 = vsyncpa [#allocation4], 0  ;;  %s14_s11 = sshll.u32 %s266_s0, 4  ;;  %s225_s12 = smov [#allocation2]   ;;  %s15_s11 = int_to_ptr.hbm [resolvable:$true] %s14_s11 }
   0x3   :  { %s16_s13 = sshll.u32 %s225_s12, 4  ;;  %s27_s16 = sshll.u32 %s267_s1, 4  ;;  %s17_s13 = int_to_ptr.vmem [resolvable:$true] %s16_s13  ;;  %s28_s16 = int_to_ptr.hbm [resolvable:$true] %s27_s16 }
   0x4   :  { %s226_s17 = smov 128   ;;  %s227_s18 = smov 8  }
   0x5   :  { %22 = dma.hbm_to_vmem [thread:$0]  %s15_s11, 256, %s17_s13, [#allocation3], %s226_s17, %s226_s17, %s227_s18  }
   0x6   :  { %s228_s19 = smov [#allocation5]  }
   0x7   :  { %s29_s20 = sshll.u32 %s228_s19, 4  ;;  %s30_s20 = int_to_ptr.vmem [resolvable:$true] %s29_s20 }
   0x8   :  { %35 = dma.hbm_to_vmem [thread:$0]  %s28_s16, 256, %s30_s20, [#allocation6], %s226_s17, %s226_s17, %s227_s18  }
   0x9   :  { %219 = dma.done.wait [#allocation3], 256  }
   0xa   :  { %220 = vsyncadd [#allocation3], 4294967040 }
   0xb   :  { %221 = dma.done.wait [#allocation6], 256  }
   0xc   :  { %222 = vsyncadd [#allocation6], 4294967040  ;;  %v44_v0 = vld [vmem:[#allocation2] sm:$0xff]  ;;  %v45_v1 = vld [vmem:[#allocation2 + $0x8] sm:$0xff]  ;;  %s229_s0 = smov [#allocation7]   ;;  %s119_s23 = sshll.u32 %s268_s2, 4  ;;  %s120_s23 = int_to_ptr.hbm [resolvable:$true] %s119_s23 }
   0xd   :  { %v48_v2 = vand.u32 2147483647, %v44_v0  ;;  %v49_v3 = vand.u32 2147483647, %v45_v1  ;;  %v46_v16 = vld [vmem:[#allocation5] sm:$0xff]  ;;  %v47_v18 = vld [vmem:[#allocation5 + $0x8] sm:$0xff] }
   0xe   :  { %v56_v26 = vmax.f32 %v44_v0, 0.0  ;;  %v58_v27 = vmul.f32 %v46_v16, %v44_v0  ;;  %v57_v30 = vmax.f32 %v45_v1, 0.0  ;;  %v59_v31 = vmul.f32 %v47_v18, %v45_v1  ;;  %s117_s1 = sshll.u32 %s229_s0, 4  ;;  %s118_s1 = int_to_ptr.vmem [resolvable:$true] %s117_s1 }
   0xf   :  { %v50_v4 = vsub.f32 0.0, %v48_v2  ;;  %v51_v5 = vsub.f32 0.0, %v49_v3  ;;  %vm92_vm0 = vcmp.ge.f32.partialorder %v44_v0, 0.0  ;;  %vm93_vm1 = vcmp.ge.f32.partialorder %v45_v1, 0.0 }
  0x10   :  { %v60_v42 = vsub.f32 %v56_v26, %v58_v27  ;;  %v61_v43 = vsub.f32 %v57_v30, %v59_v31  ;;  %vm98_vm4 = vcmp.eq.f32.partialorder %v46_v16, 1.0  ;;  %vm99_vm5 = vcmp.eq.f32.partialorder %v47_v18, 1.0 }
  0x11   :  { %v52_v6 = vmul.f32 1.442695, %v50_v4  ;;  %v54_v7 = vmul.f32 1.442695, %v51_v5 }
  0x13   :  { %135 = vpow2.f32 %v52_v6 }
  0x14   :  { %137 = vpow2.f32 %v54_v7 }
  0x19   :  { %v136_v8 = vpop.eup %135 }
  0x1a   :  { %v138_v9 = vpop.eup %137  ;;  %v62_v10 = vadd.f32 1.0, %v136_v8  ;;  %v65_v12 = vmul.f32 -0.5, %v136_v8  ;;  %v68_v22 = vand.u32 2147483647, %v136_v8 }
  0x1b   :  { %v71_v11 = vadd.f32 1.0, %v138_v9  ;;  %v74_v13 = vmul.f32 -0.5, %v138_v9  ;;  %v77_v28 = vand.u32 2147483647, %v138_v9 }
  0x1c   :  { %139 = vrcp.f32 %v62_v10  ;;  %v66_v19 = vadd.f32 1.0, %v65_v12  ;;  %vm251_vm2 = vcmp.lt.f32.partialorder %v68_v22, 0.0004427343 }
  0x1d   :  { %141 = vrcp.f32 %v71_v11  ;;  %v75_v23 = vadd.f32 1.0, %v74_v13  ;;  %vm255_vm3 = vcmp.lt.f32.partialorder %v77_v28, 0.0004427343 }
  0x1e   :  { %143 = vlog2.f32 %v62_v10  ;;  %v67_v34 = vmul.f32 %v136_v8, %v66_v19 }
  0x1f   :  { %145 = vlog2.f32 %v71_v11  ;;  %v76_v38 = vmul.f32 %v138_v9, %v75_v23 }
  0x22   :  { %v140_v14 = vpop.eup %139 }
  0x23   :  { %v142_v15 = vpop.eup %141  ;;  %v86_v17 = vmul.f32 %v140_v14, %v62_v10 }
  0x24   :  { %v87_v20 = vmul.f32 %v142_v15, %v71_v11  ;;  %v144_v21 = vpop.eup %143 }
  0x25   :  { %v88_v24 = vsub.f32 2.0, %v86_v17  ;;  %v146_v25 = vpop.eup %145  ;;  %v64_v33 = vmul.f32 0.6931472, %v144_v21 }
  0x26   :  { %v89_v29 = vsub.f32 2.0, %v87_v20  ;;  %v73_v37 = vmul.f32 0.6931472, %v146_v25 }
  0x27   :  { %v90_v32 = vmul.f32 %v140_v14, %v88_v24  ;;  %v70_v45 = vsel %vm251_vm2, %v67_v34, %v64_v33 }
  0x28   :  { %v91_v35 = vmul.f32 %v142_v15, %v89_v29  ;;  %v79_v48 = vsel %vm255_vm3, %v76_v38, %v73_v37  ;;  %v80_v51 = vadd.f32 %v70_v45, %v60_v42 }
  0x29   :  { %v94_v39 = vmul.f32 %v136_v8, %v90_v32  ;;  %v81_v54 = vadd.f32 %v79_v48, %v61_v43 }
  0x2a   :  { %v95_v41 = vmul.f32 %v138_v9, %v91_v35 }
  0x2b   :  { %v96_v44 = vsel %vm92_vm0, %v90_v32, %v94_v39 }
  0x2c   :  { %v97_v46 = vsel %vm93_vm1, %v91_v35, %v95_v41  ;;  %v100_v47 = vsub.f32 1.0, %v96_v44 }
  0x2d   :  { %v101_v49 = vsub.f32 1.0, %v97_v46 }
  0x2e   :  { %v102_v50 = vsel %vm98_vm4, %v96_v44, %v100_v47 }
  0x2f   :  { %v103_v52 = vsel %vm99_vm5, %v97_v46, %v101_v49  ;;  %v104_v53 = vsub.f32 1.0, %v102_v50 }
  0x30   :  { %v105_v55 = vsub.f32 1.0, %v103_v52 }
  0x31   :  { %v106_v56 = vmul.f32 %v104_v53, %v104_v53 }
  0x32   :  { %v107_v57 = vmul.f32 %v105_v55, %v105_v55 }
  0x33   :  { %v108_v58 = vmul.f32 %v106_v56, %v80_v51 }
  0x34   :  { %v109_v59 = vmul.f32 %v107_v57, %v81_v54 }
  0x36   :  { %v110_v60 = vadd.f32 %v109_v59, %v108_v58 }
  0x38   :  { %111 = vst [vmem:[#allocation7] sm:$0xff] %v110_v60 }
  0x39   :  { %122 = dma.vmem_to_hbm [thread:$0]  %s118_s1, 128, %s120_s23, [#allocation4]  }
  0x3a   :  { %223 = dma.done.wait [#allocation4], 128  }
  0x3b   :  { %224 = vsyncadd [#allocation4], 4294967168 }
  0x3c   :  { %127 = vsyncpa [#allocation3], 1 }
  0x3d   :  { %128 = vsyncpa [#allocation6], 1 }
  0x3e   :  { %129 = vsyncpa [#allocation4], 1 }

</bundles_post_ra>
